<compile_context>
chip_gen: v7x
topology: tpu7x:2x2x1
jax: 0.10.0
libtpu: 0.0.40
codegen_flags: <defaults>
</compile_context>

<pallas_src>
import functools
import math

import jax
import jax.numpy as jnp
from jax.experimental import pallas as pl
from jax.experimental.pallas import tpu as pltpu


def _sinusoidal_kernel(time_ref, freqs_ref, phase_ref, out_ref, *, tb: int):
    # time_ref : (b_pad, 1)  f32 VMEM, resident across all grid steps
    # freqs_ref: (1, dim)    f32 VMEM, resident (freqs duplicated sin|cos halves)
    # phase_ref: (1, dim)    f32 VMEM, resident ([0]*half + [pi/2]*half)
    # out_ref  : (tb, dim)   VMEM, one full-width lane-dense store per step
    i = pl.program_id(0)
    row0 = pl.multiple_of(i * tb, tb)
    t = time_ref[pl.ds(row0, tb), :]                     # (tb, 1)
    args = t * freqs_ref[...] + phase_ref[...]           # (tb, dim)
    out_ref[...] = jnp.sin(args).astype(out_ref.dtype)   # sin(x+pi/2) == cos(x)


def _choose_batch_tile(b: int, dim: int, out_bytes: int) -> int:
    """Batch tile: sublane-aligned, <= ~4 MiB per output block (so the
    double-buffered pair stays ~8 MiB: fits v5e's 16 MiB default scoped VMEM and
    v7x's 64 MiB physical VMEM), and <= cdiv(b, 2) so the grid has >= 2 steps
    for v7x's two TensorCores."""
    align = 16 if out_bytes < 4 else 8   # (16,128) tiling for 2-byte outputs
    if b <= align:
        return b                          # full-extent block is always legal
    max_rows_by_vmem = max(align, (4 * 1024 * 1024) // (dim * out_bytes))
    tb = min(b, 1024, max_rows_by_vmem, pl.cdiv(b, 2))
    return max(align, (tb // align) * align)


@functools.partial(jax.jit, static_argnames=("dim", "out_dtype"))
def sinusoidal_position_embeddings(time: jax.Array, dim: int,
                                   out_dtype=jnp.float32) -> jax.Array:
    """Equivalent of SinusoidalPositionEmbeddings(dim)(time).

    time: (B,) array of timesteps.
    returns: (B, dim) embeddings, [:, :dim//2] = sin, [:, dim//2:] = cos.
    """
    assert dim % 2 == 0, "dim must be even"
    assert dim >= 4, "dim must be >= 4 (half_dim - 1 > 0)"
    half_dim = dim // 2
    log_coef = math.log(10000.0) / (half_dim - 1)

    b = time.shape[0]
    out_bytes = jnp.dtype(out_dtype).itemsize
    tb = _choose_batch_tile(b, dim, out_bytes)
    num_blocks = pl.cdiv(b, tb)
    b_pad = num_blocks * tb

    time_2d = time.astype(jnp.float32).reshape(b, 1)
    if b_pad != b:
        # Pad so the in-kernel pl.ds slice of the resident time block never
        # reads out of bounds; the padded output rows are dropped by Pallas'
        # masked partial writeback of the last block.
        time_2d = jnp.pad(time_2d, ((0, b_pad - b), (0, 0)))

    # Hoisted tables (phase trick): sin(t*f + 0) = sin, sin(t*f + pi/2) = cos.
    half_freqs = jnp.exp(jnp.arange(half_dim, dtype=jnp.float32) * (-log_coef))
    freqs_full = jnp.concatenate([half_freqs, half_freqs]).reshape(1, dim)
    phase = jnp.concatenate([
        jnp.zeros((half_dim,), jnp.float32),
        jnp.full((half_dim,), 0.5 * math.pi, jnp.float32),
    ]).reshape(1, dim)

    cost = pl.CostEstimate(
        flops=2 * b * dim,                                        # mul + add
        transcendentals=b * dim,                                  # one sin/elem
        bytes_accessed=b * dim * out_bytes + b_pad * 4 + 2 * dim * 4,
    )

    return pl.pallas_call(
        functools.partial(_sinusoidal_kernel, tb=tb),
        out_shape=jax.ShapeDtypeStruct((b, dim), out_dtype),
        grid_spec=pltpu.PrefetchScalarGridSpec(
            num_scalar_prefetch=0,
            grid=(num_blocks,),
            in_specs=[
                pl.BlockSpec((b_pad, 1), lambda i: (0, 0)),   # resident timesteps
                pl.BlockSpec((1, dim), lambda i: (0, 0)),     # resident freqs
                pl.BlockSpec((1, dim), lambda i: (0, 0)),     # resident phase
            ],
            out_specs=pl.BlockSpec((tb, dim), lambda i: (i, 0)),
        ),
        compiler_params=pltpu.CompilerParams(
            # Shards batch tiles across v7x's two TensorCores; no-op on v5e/v6e.
            dimension_semantics=("parallel",),
        ),
        cost_estimate=cost,
    )(time_2d, freqs_full, phase)


def _reference(time: jax.Array, dim: int) -> jax.Array:
    """Pure-JAX reference mirroring the PyTorch module exactly."""
    half_dim = dim // 2
    emb = math.log(10000.0) / (half_dim - 1)
    emb = jnp.exp(jnp.arange(half_dim, dtype=jnp.float32) * -emb)
    emb = time.astype(jnp.float32)[:, None] * emb[None, :]
    return jnp.concatenate([jnp.sin(emb), jnp.cos(emb)], axis=-1)


if __name__ == "__main__":
    key = jax.random.PRNGKey(0)
    B = 16
    DIM = 128  # lane-dense embedding dimension (typical time-MLP input width)

    # Deterministic example timesteps (diffusion step indices as floats).
    time = jax.random.uniform(key, (B,), dtype=jnp.float32,
                              minval=0.0, maxval=1000.0)

    out = sinusoidal_position_embeddings(time, DIM)
    out = jax.block_until_ready(out)

    ref = _reference(time, DIM)
    assert out.shape == (B, DIM), out.shape
    assert out.dtype == jnp.float32, out.dtype
    # Tolerance note: the kernel computes cos(x) as sin(x + pi/2); for x ~ 1e3
    # the f32 rounding of (x + pi/2) introduces up to ~0.5 ulp(x) ~ 3e-5 of
    # argument error, hence the slightly relaxed atol vs. the exact-cos ref.
    assert jnp.allclose(out, ref, atol=2e-4, rtol=1e-4), float(
        jnp.max(jnp.abs(out - ref))
    )

    print("KERNEL_OK")
</pallas_src>

<mosaic_0001>
module attributes {stable_mosaic.version = 11 : i64} {
  func.func @_sinusoidal_kernel(%arg0: i32, %arg1: memref<16x1xf32, #tpu.memory_space<vmem>>, %arg2: memref<1x128xf32, #tpu.memory_space<vmem>>, %arg3: memref<1x128xf32, #tpu.memory_space<vmem>>, %arg4: memref<8x128xf32, #tpu.memory_space<vmem>>) attributes {dimension_semantics = [#tpu.dimension_semantics<parallel>], iteration_bounds = array<i64: 2>, scalar_prefetch = 0 : i64, scratch_operands = 0 : i64, tpu.core_type = #tpu.core_type<tc>, window_params = [{pipeline_mode = #tpu.pipeline_mode<synchronous>, transform_indices = @transform_0, window_bounds = array<i64: 16, 1>}, {pipeline_mode = #tpu.pipeline_mode<synchronous>, transform_indices = @transform_1, window_bounds = array<i64: 1, 128>}, {pipeline_mode = #tpu.pipeline_mode<synchronous>, transform_indices = @transform_2, window_bounds = array<i64: 1, 128>}, {transform_indices = @transform_3, window_bounds = array<i64: 8, 128>}]} {
    %c8_i32 = arith.constant 8 : i32
    %0 = arith.muli %arg0, %c8_i32 : i32
    %1 = tpu.assume_multiple %0, 8 : i32
    %2 = arith.index_cast %1 : i32 to index
    %c0 = arith.constant 0 : index
    %3 = vector.load %arg1[%2, %c0] : memref<16x1xf32, #tpu.memory_space<vmem>>, vector<8x1xf32>
    %c0_0 = arith.constant 0 : index
    %c0_1 = arith.constant 0 : index
    %4 = vector.load %arg2[%c0_0, %c0_1] : memref<1x128xf32, #tpu.memory_space<vmem>>, vector<1x128xf32>
    %5 = vector.broadcast %3 : vector<8x1xf32> to vector<8x128xf32>
    %6 = vector.broadcast %4 : vector<1x128xf32> to vector<8x128xf32>
    %7 = arith.mulf %5, %6 : vector<8x128xf32>
    %c0_2 = arith.constant 0 : index
    %c0_3 = arith.constant 0 : index
    %8 = vector.load %arg3[%c0_2, %c0_3] : memref<1x128xf32, #tpu.memory_space<vmem>>, vector<1x128xf32>
    %9 = vector.broadcast %8 : vector<1x128xf32> to vector<8x128xf32>
    %10 = arith.addf %7, %9 : vector<8x128xf32>
    %11 = math.sin %10 : vector<8x128xf32>
    %c0_4 = arith.constant 0 : index
    %c0_5 = arith.constant 0 : index
    %12 = vector.load %arg4[%c0_4, %c0_5] : memref<8x128xf32, #tpu.memory_space<vmem>>, vector<8x128xf32>
    tpu.vector_store %arg4[%c0_4, %c0_5], %11 {strides = array<i32>} : memref<8x128xf32, #tpu.memory_space<vmem>>, vector<8x128xf32>,
    return
  }
  func.func @transform_0(%arg0: i32) -> (i32, i32) {
    %c0_i32 = arith.constant 0 : i32
    %c0_i32_0 = arith.constant 0 : i32
    %c0_i32_1 = arith.constant 0 : i32
    return %c0_i32, %c0_i32_0 : i32, i32
  }
  func.func @transform_1(%arg0: i32) -> (i32, i32) {
    %c0_i32 = arith.constant 0 : i32
    %c0_i32_0 = arith.constant 0 : i32
    %c0_i32_1 = arith.constant 0 : i32
    return %c0_i32, %c0_i32_0 : i32, i32
  }
  func.func @transform_2(%arg0: i32) -> (i32, i32) {
    %c0_i32 = arith.constant 0 : i32
    %c0_i32_0 = arith.constant 0 : i32
    %c0_i32_1 = arith.constant 0 : i32
    return %c0_i32, %c0_i32_0 : i32, i32
  }
  func.func @transform_3(%arg0: i32) -> (i32, i32) {
    %c0_i32 = arith.constant 0 : i32
    %c0_i32_0 = arith.constant 0 : i32
    return %arg0, %c0_i32 : i32, i32
  }
}

</mosaic_0001>

<bundles_post_ra>
// kernel: sinusoidal_position_embeddings.1
= control target key start
LH: loop header
LB: loop body
LE: loop exit
PB: predicated region body
PF: predicated region fallthrough
CT: control target
= control target key end

     0   :  { %8 = vsyncpa [#allocation3], 0  ;;  %s629_s0 = inlined_call_operand.vmem [shape: f32[16,1], index: 0, kind: input, shape index: {}]   ;;  %s630_s1 = inlined_call_operand.vmem [shape: f32[1,128], index: 1, kind: input, shape index: {}]   ;;  %s631_s2 = inlined_call_operand.vmem [shape: f32[1,128], index: 2, kind: input, shape index: {}]   ;;  %s632_s3 = inlined_call_operand.hbm [shape: f32[16,128], index: 3, kind: output, shape index: {}]  }
   0x1   :  { %10 = vsyncpa [#allocation3 + $0x1], 0  ;;  %s503_s12 = smov 0   ;;  %s505_s13 = smov 0  }
   0x2   :  { %s507_s14 = smov 0   ;;  %s509_s15 = smov 0  }
   0x3 LB: > { %s524_s16 = sadd.s32 4294967295, %s473_s15   ;;  %s341_s17 = sadd.s32 4294967294, %s473_s15   ;;  %s473_s15 = sphi %s509_s15, %s638_s15   ;;  %s469_s14 = sphi %s507_s14, %s637_s14   ;;  %s465_s13 = sphi %s505_s13, %s636_s13   ;;  %s461_s12 = sphi %s503_s12, %s635_s12  }
   0x4   : > { %s528_s18 = sadd.s32 1, %s473_s15   ;;  %s86_s19 = sadd.s32 1, %s469_s14 }
   0x5   : > { %s83_s20 = ssub.s32 %s473_s15, %s528_s18  ;;  %p96_p0 = scmp.ne.s32.totalorder %s469_s14, %s465_s13 }
   0x6   : > { %p84_p1 = scmp.eq.s32.totalorder %s83_s20, 0  ;;  %p97_p2 = scmp.eq.s32.totalorder %s524_s16, 1 }
   0x7   : > { %p102_p3 = scmp.ne.s32.totalorder %s465_s13, %s461_s12  ;;  %p103_p4 = scmp.eq.s32.totalorder %s341_s17, 1 }
   0x8   : > { %s539_s21 = scalar_select %p84_p1, %s469_s14, %s86_s19  }
   0x9   : > { %p541_p5 = por %p97_p2, %p96_p0  ;;  %p545_p6 = por %p103_p4, %p102_p3 }
   0xa   : > { %p343_p7 = scmp.ge.s32.totalorder %s473_s15, 1  ;;  %p130_p8 = scmp.lt.s32.totalorder %s473_s15, 3 }
   0xc   : > { %p131_p9 = pnand %p343_p7, %p130_p8 }
   0xd   : > { %s345_s24 = sshll.u32 (!%p131_p9), %s524_s16, 3  ;;  %v475_v0 = vmov (!%p131_p9), 0   ;;  %v346_v2 = vld [vmem:[%s630_s1] ss:$0 sm:$0xff] (!%p131_p9)  ;;  %v476_v17 = vmov (!%p131_p9), 683565275  }
   0xe   : > { %134 = sbr.rel (%p131_p9) target bundleno = 241 (0xf1), region = 32  ;;  %406 = vset.pattern.permute.xlu0 (!%p131_p9), %v475_v0  ;;  %s150_s27 = scalar_lea.vmem (!%p131_p9), %s629_s0, %s345_s24  ;;  %v347_v3 = vld [vmem:[%s631_s2] ss:$0 sm:$0xff] (!%p131_p9)  ;;  %v477_v19 = vmov (!%p131_p9), 2475754826  }
   0xf   : > { %v151_v1 = vld [vmem:[%s150_s27] sm:$0xff] (!%p131_p9)  ;;  %v478_v22 = vmov (!%p131_p9), 2131351028   ;;  %v479_v25 = vmov (!%p131_p9), 2102212464   ;;  %s146_s5 = sand.u32 (!%p131_p9), 1, %s465_s13  }
  0x10   : > { %155 = vperm.xlu0 (!%p131_p9), %406, %v151_v1   ;;  %v480_v28 = vmov (!%p131_p9), 920167782   ;;  %v481_v31 = vmov (!%p131_p9), 1326507024   ;;  %s344_s6 = sshll.u32 (!%p131_p9), %s146_s5, 3  ;;  %s353_s7 = sshll.u32 (!%p131_p9), %s524_s16, 7 }
  0x11   : > { %s148_s8 = scalar_lea.vmem (!%p131_p9), [#allocation2], %s344_s6  ;;  %s587_s17 = scalar_lea.hbm (!%p131_p9), %s632_s3, %s353_s7 }
  0x12   : > { %s292_s9 = sshll.u32 (!%p131_p9), %s148_s8, 4  ;;  %s279_s16 = scalar_lea.sflag (!%p131_p9), [#allocation3], %s146_s5  ;;  %s589_s9 = int_to_ptr.vmem [resolvable:$true] %s292_s9 }
  0x13   : > { %s411_s19 = scalar_lea.vmem (!%p131_p9), %s589_s9, 128  ;;  %s482_s20 = smov (!%p131_p9), [#allocation2]  }
  0x14   : > { %p412_p10 = scmp.ne.s32.totalorder (!%p131_p9), %s589_s9, %s411_s19  ;;  %s415_s24 = sshll.u32 (!%p131_p9), %s482_s20, 4  ;;  %s416_s24 = int_to_ptr.vmem [resolvable:$false] %s415_s24 }
  0x15   : > { %s417_s25 = scalar_lea.vmem %s416_s24, 256  ;;  %p418_p13 = scmp.lt.s32.totalorder %s589_s9, %s416_s24 }
  0x16   : > { %p413_p11 = pnand %p412_p10, %p541_p5  ;;  %p419_p0 = scmp.lt.s32.totalorder %s417_s25, %s411_s19 }
  0x18   : > { %p414_p12 = pneg %p413_p11  ;;  %p420_p1 = por %p419_p0, %p418_p13 }
  0x1a   : > { %p421_p2 = pnand %p420_p1, %p414_p12 }
  0x8f   : > { %v156_v4 = vpop.permute.xlu0 %155 }
  0x90   : > { %v164_v5 = vmul.f32 %v346_v2, %v156_v4 }
  0x92   : > { %v561_v6 = vadd.f32 %v347_v3, %v164_v5 }
  0x94   : > { %v176_v7 = vand.u32 2139095040, %v561_v6  ;;  %v173_v11 = vand.u32 2147483647, %v561_v6  ;;  %vm175_vm7 = vcmp.lt.s32.totalorder %v561_v6, 0  ;;  %vm265_vm12 = vweird.f32 %v561_v6 }
  0x96   : > { %v177_v8 = vshrl.u32 %v176_v7, 23  ;;  %v180_v14 = vand.u32 8388607, %v173_v11  ;;  %vm174_vm8 = vcmp.le.f32.partialorder %v173_v11, 0.7853982 }
  0x98   : > { %v348_v9 = vadd.s32 4294967169, %v177_v8  ;;  %v181_v33 = vor.u32 8388608, %v180_v14 }
  0x9a   : > { %v183_v10 = vadd.s32 1, %v348_v9  ;;  %v221_v47 = vshll.u32 %v181_v33, 8 }
  0x9c   : > { %vm184_vm0 = vcmp.gt.s32.totalorder %v183_v10, 0 }
  0x9d   : > { %v185_v12 = vsel %vm184_vm0, %v183_v10, 0 }
  0x9e   : > { %v187_v13 = vand.u32 31, %v185_v12  ;;  %v186_v16 = vshrl.u32 %v185_v12, 5 }
  0xa0   : > { %v188_v15 = vsub.s32 32, %v187_v13  ;;  %v190_v18 = vshll.u32 %v476_v17, %v187_v13  ;;  %v193_v20 = vshll.u32 %v477_v19, %v187_v13  ;;  %v196_v24 = vshll.u32 %v478_v22, %v187_v13 }
  0xa1   : > { %v199_v27 = vshll.u32 %v479_v25, %v187_v13  ;;  %v202_v30 = vshll.u32 %v480_v28, %v187_v13  ;;  %vm205_vm1 = vcmp.lt.s32.totalorder %v186_v16, 1  ;;  %vm208_vm2 = vcmp.lt.s32.totalorder %v186_v16, 4 }
  0xa2   : > { %v191_v21 = vshrl.u32 %v477_v19, %v188_v15  ;;  %v194_v23 = vshrl.u32 %v478_v22, %v188_v15  ;;  %v197_v26 = vshrl.u32 %v479_v25, %v188_v15  ;;  %v200_v29 = vshrl.u32 %v480_v28, %v188_v15 }
  0xa3   : > { %v203_v32 = vshrl.u32 %v481_v31, %v188_v15  ;;  %v189_v42 = vshrl.u32 %v476_v17, %v188_v15  ;;  %vm207_vm3 = vcmp.lt.s32.totalorder %v186_v16, 3  ;;  %vm206_vm4 = vcmp.lt.s32.totalorder %v186_v16, 2 }
  0xa4   : > { %v192_v34 = vor.u32 %v191_v21, %v190_v18  ;;  %v195_v35 = vor.u32 %v194_v23, %v193_v20  ;;  %v198_v36 = vor.u32 %v197_v26, %v196_v24  ;;  %v201_v37 = vor.u32 %v200_v29, %v199_v27 }
  0xa5   : > { %v204_v38 = vor.u32 %v203_v32, %v202_v30 }
  0xa6   : > { %v210_v39 = vsel %vm208_vm2, %v198_v36, 2102212464  ;;  %v213_v40 = vsel %vm205_vm1, %v192_v34, %v195_v35  ;;  %v217_v41 = vsel %vm205_vm1, %v195_v35, %v198_v36  ;;  %v214_v43 = vsel %vm208_vm2, %v201_v37, 920167782 }
  0xa7   : > { %v218_v44 = vsel %vm208_vm2, %v204_v38, 1326507024  ;;  %v215_v45 = vsel %vm207_vm3, %v198_v36, %v214_v43  ;;  %v209_v48 = vsel %vm205_vm1, %v189_v42, %v192_v34  ;;  %v211_v49 = vsel %vm207_vm3, %v195_v35, %v210_v39 }
  0xa8   : > { %v219_v46 = vsel %vm207_vm3, %v201_v37, %v218_v44  ;;  %v216_v50 = vsel %vm206_vm4, %v213_v40, %v215_v45  ;;  %v212_v56 = vsel %vm206_vm4, %v209_v48, %v211_v49 }
  0xa9   : > { %v220_v51 = vsel %vm206_vm4, %v217_v41, %v219_v46  ;;  %v570_v54 = vmul.u32.u64.low %v221_v47, %v216_v50  ;;  %v571_v55 = vmul.u32.u64.high %v221_v47, %v216_v50, %v570_v54  ;;  %v228_v58 = vmul.u32 %v221_v47, %v212_v56 }
  0xaa   : > { %v567_v52 = vmul.u32.u64.low %v221_v47, %v220_v51  ;;  %v568_v53 = vmul.u32.u64.high %v221_v47, %v220_v51, %v567_v52 }
  0xab   : > { %v231_v57 = vadd.s32 1, %v571_v55 }
  0xac   : > { %vm230_vm5 = vc.u32 %v568_v53, %v570_v54  ;;  %v229_v7 = vadd.s32 %v570_v54, %v568_v53 }
  0xad   : > { %v232_v59 = vsel %vm230_vm5, %v231_v57, %v571_v55 }
  0xae   : > { %v233_v60 = vadd.s32 %v232_v59, %v228_v58 }
  0xb0   : > { %v234_v61 = vadd.s32 536870912, %v233_v60 }
  0xb2   : > { %v235_v62 = vshrl.u32 %v234_v61, 30 }
  0xb4   : > { %v236_v63 = vshll.u32 %v235_v62, 30  ;;  %v259_v20 = vsub.s32 4, %v235_v62 }
  0xb6   : > { %v237_v0 = vsub.s32 %v233_v60, %v236_v63  ;;  %v260_v23 = vsel %vm175_vm7, %v259_v20, %v235_v62 }
  0xb7   : > { %v262_v25 = vsel %vm174_vm8, 0, %v260_v23 }
  0xb8   : > { %v239_v1 = vsub.s32 0, %v237_v0  ;;  %v266_v26 = vadd.s32 3, %v262_v25 }
  0xba   : > { %v349_v2 = vmin.u32 %v239_v1, %v237_v0  ;;  %v267_v27 = vand.u32 3, %v266_v26 }
  0xbc   : > { %v241_v3 = vclz %v349_v2  ;;  %vm272_vm9 = vcmp.eq.s32.totalorder %v267_v27, 2  ;;  %vm269_vm10 = vcmp.eq.s32.totalorder %v267_v27, 0  ;;  %vm268_vm11 = vcmp.lt.s32.totalorder %v267_v27, 2 }
  0xbe   : > { %v350_v4 = vadd.s32 4294967294, %v241_v3 }
  0xc0   : > { %vm351_vm6 = vcmp.lt.s32.totalorder %v350_v4, 0 }
  0xc1   : > { %v244_v5 = vsel %vm351_vm6, 0, %v350_v4 }
  0xc2   : > { %v245_v8 = vsub.s32 32, %v244_v5  ;;  %v249_v9 = vsub.s32 4294967266, %v244_v5  ;;  %v246_v10 = vshll.u32 %v237_v0, %v244_v5 }
  0xc4   : > { %v247_v12 = vshrl.u32 %v229_v7, %v245_v8  ;;  %v250_v13 = vadd.s32 127, %v249_v9 }
  0xc6   : > { %v248_v14 = vor.u32 %v247_v12, %v246_v10  ;;  %v251_v15 = vshll.u32 %v250_v13, 23 }
  0xc8   : > { %v252_v16 = vor.u32 4788187, %v251_v15  ;;  %v255_v18 = vcvt.s32.f32 %v248_v14 }
  0xca   : > { %v253_v17 = vand.u32 2147483647, %v252_v16 }
  0xcc   : > { %v256_v19 = vmul.f32 %v255_v18, %v253_v17 }
  0xce   : > { %v257_v21 = vxor.u32 2147483648, %v256_v19 }
  0xd0   : > { %v258_v22 = vsel %vm175_vm7, %v257_v21, %v256_v19 }
  0xd1   : > { %v261_v24 = vsel %vm174_vm8, %v561_v6, %v258_v22 }
  0xd2   : > { %407 = vcosq.f32 %v261_v24 }
  0xd3   : > { %409 = vsinq.f32 %v261_v24 }
  0xdc   : > { %v408_v28 = vpop.eup %407 }
  0xdd   : > { %v410_v29 = vpop.eup %409  ;;  %v273_v30 = vxor.u32 2147483648, %v408_v28 }
  0xde   : > { %v270_v31 = vxor.u32 2147483648, %v410_v29 }
  0xdf   : > { %v274_v11 = vsel %vm272_vm9, %v273_v30, %v410_v29 }
  0xe0   : > { %v271_v32 = vsel %vm269_vm10, %v408_v28, %v270_v31 }
  0xe1   : > { %v275_v33 = vsel %vm268_vm11, %v271_v32, %v274_v11 }
  0xe2   : > { %v276_v34 = vsel %vm265_vm12, nan, %v275_v33 }
  0xe3   : > { %277 = vst [vmem:[%s148_s8] sm:$0xff] %v276_v34 }
  0xe4   : > { %424 = shalt.err (!%p421_p2)
}
  0xe5   : > { %s425_s26 = scalar_lea.hbm %s587_s17, 128  ;;  %s429_s29 = scalar_lea.hbm %s632_s3, 256 }
  0xe6   : > { %p426_p3 = scmp.ne.s32.totalorder %s587_s17, %s425_s26  ;;  %p430_p8 = scmp.lt.u32.totalorder %s587_s17, %s632_s3 }
  0xe7   : > { %p431_p9 = scmp.lt.u32.totalorder %s429_s29, %s425_s26  ;;  %p433_p11 = scmp.lt.u32.totalorder %s425_s26, %s587_s17 }
  0xe8   : > { %p427_p4 = pnand %p426_p3, %p541_p5 }
  0xe9   : > { %p432_p10 = por %p431_p9, %p430_p8 }
  0xea   : > { %p428_p7 = pneg %p427_p4 }
  0xeb   : > { %p434_p12 = por %p433_p11, %p432_p10 }
  0xed   : > { %p435_p13 = pnand %p434_p12, %p428_p7 }
  0xef   : > { %438 = shalt.err (!%p435_p13)
}
  0xf0   : > { %360 = dma.vmem_to_hbm [thread:$0]  (%p541_p5), %s589_s9, 128, %s587_s17, %s279_s16  }
  0xf1 PF: > { %p366_p0 = scmp.ge.s32.totalorder %s473_s15, 2  ;;  %s304_s5 = sand.u32 1, %s461_s12  }
  0xf2   : > { %s305_s6 = scalar_lea.sflag [#allocation3], %s304_s5 }
  0xf3   : > { %p363_p1 = pnand %p366_p0, %p545_p6 }
  0xf5   : > { %456 = dma.done.wait (!%p363_p1), %s305_s6, 128  }
  0xf6   : > { %458 = vsyncadd (!%p363_p1), %s305_s6, 4294967168  ;;  %p13_p2 = scmp.ge.s32.totalorder %s528_s18, 4   ;;  %s635_s12 = smov %s465_s13 }
  0xf7   : > { %s636_s13 = smov %s469_s14  ;;  %s637_s14 = smov %s539_s21 }
  0xf8   : > { %s638_s15 = smov %s528_s18  ;;  %15 = sbr.rel (!%p13_p2) target bundleno = 3 (0x3), region = 65 }
  0xff   :  { %310 = vsyncpa [#allocation3], 1 }
 0x100   :  { %312 = vsyncpa [#allocation3 + $0x1], 1 }

</bundles_post_ra>
